<compile_context>
chip_gen: v6e
topology: v6e:2x2x1
jax: 0.10.0
libtpu: 0.0.40
codegen_flags: <defaults>
</compile_context>

<pallas_src>
import jax
import jax.numpy as jnp
from jax import lax
from jax.experimental import pallas as pl
from jax.experimental.pallas import tpu as pltpu


def _receiver_kernel(x_ref, inp_ref, wblk_ref, b_ref, out_ref):
    # x_ref:    (TB, L)       batch-tile of message embeddings
    # inp_ref:  (TB, C*F)     batch-tile of candidate features, lane-dense
    # wblk_ref: (C*F, C*L)    block-diagonal fc1 weight^T (VMEM-resident)
    # b_ref:    (1, C*L)      fc1 bias tiled across candidates (resident)
    # out_ref:  (TB, C)       log-softmax over candidates for this tile
    tb, L = x_ref.shape
    CL = b_ref.shape[1]
    C = CL // L

    # One dense MXU matmul per step: (TB, 128) @ (128, 256) -> (TB, 256).
    # Bias add + tanh run lane-dense on the (TB, C*L) activation.
    emb = jnp.tanh(
        jnp.dot(inp_ref[...], wblk_ref[...], preferred_element_type=jnp.float32)
        + b_ref[...]
    )                                                              # (TB, C*L)

    # energies[b, c] = sum_l emb[b, c*L + l] * x[b, l]
    # Segmented 32-lane reduce: split the lane dim and sum (VPU + XLU; the
    # kernel is memory-bound so the relayout is off the critical path).
    emb3 = emb.reshape(tb, C, L)                                   # (TB, C, L)
    energies = jnp.sum(emb3 * x_ref[...][:, None, :], axis=-1)     # (TB, C)

    # Numerically-stable log-softmax over candidates.
    m = jnp.max(energies, axis=-1, keepdims=True)
    z = energies - m
    lse = jnp.log(jnp.sum(jnp.exp(z), axis=-1, keepdims=True))
    out_ref[...] = (z - lse).astype(out_ref.dtype)


def receiver_reinforce_forward(x, _input, w, bias, *, tb=1024, input_dtype=None):
    """Forward pass of ReceiverReinforce.

    x:      (B, L)  f32   message embedding (L = linear_units)
    _input: (B, C, F) f32 candidate features (F = n_features)
    w:      (L, F)  f32   fc1 weight (torch layout: out x in)
    bias:   (L,)    f32   fc1 bias
    tb:     requested batch tile (rows per grid step)
    input_dtype: optionally jnp.bfloat16 to halve the _input/weight HBM
                 stream (recommended on v5e; breaks 1e-5 parity, ~1e-3).
    """
    B, L = x.shape
    _, C, F = _input.shape
    CF, CL = C * F, C * L

    # ---- batch-tile selection ------------------------------------------
    tb = max(8, min(int(tb), ((B + 7) // 8) * 8))
    tb -= tb % 8
    # Prefer >= 2 grid steps when the batch allows it (v7x has 2 TensorCores
    # and the grid axis is marked "parallel").
    if B > 8 and -(-B // tb) < 2:
        tb = max(8, ((-(-B // 2) + 7) // 8) * 8)
    Bp = -(-B // tb) * tb
    n_blocks = Bp // tb

    # ---- lane-dense operands (built once, outside the kernel) ----------
    inp2d = _input.reshape(B, CF)                       # (B, C*F) row-major flatten
    if Bp != B:
        pad = Bp - B
        x = jnp.pad(x, ((0, pad), (0, 0)))
        inp2d = jnp.pad(inp2d, ((0, pad), (0, 0)))

    # Block-diagonal weight: block (c, c) holds W^T (F, L).
    w_blk = jnp.kron(jnp.eye(C, dtype=w.dtype), jnp.transpose(w))   # (C*F, C*L)
    bias_t = jnp.tile(bias, C).reshape(1, CL)                        # (1, C*L)

    if input_dtype is not None:
        inp2d = inp2d.astype(input_dtype)
        w_blk = w_blk.astype(input_dtype)

    elt = jnp.dtype(input_dtype).itemsize if input_dtype is not None else 4
    cost = pl.CostEstimate(
        flops=2 * Bp * CF * CL + 2 * Bp * CL + 5 * Bp * C,
        transcendentals=Bp * CL + Bp * C + Bp,
        bytes_accessed=(4 * Bp * L + elt * Bp * CF + elt * CF * CL
                        + 4 * CL + 4 * Bp * C),
    )

    out = pl.pallas_call(
        _receiver_kernel,
        out_shape=jax.ShapeDtypeStruct((Bp, C), jnp.float32),
        grid_spec=pl.GridSpec(
            grid=(n_blocks,),
            in_specs=[
                pl.BlockSpec((tb, L), lambda i: (i, 0)),      # x tile
                pl.BlockSpec((tb, CF), lambda i: (i, 0)),     # _input tile (dense)
                pl.BlockSpec((CF, CL), lambda i: (0, 0)),     # block-diag weight (resident)
                pl.BlockSpec((1, CL), lambda i: (0, 0)),      # bias (resident)
            ],
            out_specs=pl.BlockSpec((tb, C), lambda i: (i, 0)),
        ),
        compiler_params=pltpu.CompilerParams(
            dimension_semantics=("parallel",),
            # Explicit scoped-VMEM budget: well above the ~few-MiB footprint
            # at tb=1024, and safely below v7x's 64 MiB physical VMEM.
            vmem_limit_bytes=48 * 1024 * 1024,
        ),
        cost_estimate=cost,
    )(x, inp2d, w_blk, bias_t)

    return out[:B]


def _reference(x, _input, w, bias):
    hp = lax.Precision.HIGHEST
    emb = jnp.tanh(jnp.einsum("bcf,lf->bcl", _input, w, precision=hp) + bias)
    energies = jnp.einsum("bcl,bl->bc", emb, x, precision=hp)
    return jax.nn.log_softmax(energies, axis=1)


if __name__ == "__main__":
    # Small shapes consistent with the module's forward.
    B = 16           # batch
    C = 8            # number of candidate inputs (softmax dim)
    n_features = 16  # per-candidate feature size
    linear_units = 32

    key = jax.random.PRNGKey(0)
    kx, ki, kw, kb = jax.random.split(key, 4)

    x = jax.random.normal(kx, (B, linear_units), dtype=jnp.float32)
    _input = jax.random.normal(ki, (B, C, n_features), dtype=jnp.float32)

    # Deterministic parameter init (torch.nn.Linear shapes: W (out, in), b (out,))
    bound = 1.0 / (n_features ** 0.5)
    w = jax.random.uniform(kw, (linear_units, n_features),
                           minval=-bound, maxval=bound, dtype=jnp.float32)
    bias = jax.random.uniform(kb, (linear_units,),
                              minval=-bound, maxval=bound, dtype=jnp.float32)

    # Default tile policy clamps tb to the batch and keeps >= 2 grid steps
    # (here tb=8, grid=(2,)); real deployments get tb up to 1024.
    out = receiver_reinforce_forward(x, _input, w, bias)
    out = jax.block_until_ready(out)

    ref = _reference(x, _input, w, bias)
    assert out.shape == (B, C)
    assert jnp.allclose(out, ref, atol=1e-5, rtol=1e-5), (
        f"max abs err {jnp.max(jnp.abs(out - ref))}"
    )

    print("KERNEL_OK")
</pallas_src>

<mosaic_0001>
module attributes {stable_mosaic.version = 11 : i64} {
  func.func @_receiver_kernel(%arg0: i32, %arg1: memref<8x32xf32, #tpu.memory_space<vmem>>, %arg2: memref<8x128xf32, #tpu.memory_space<vmem>>, %arg3: memref<128x256xf32, #tpu.memory_space<vmem>>, %arg4: memref<1x256xf32, #tpu.memory_space<vmem>>, %arg5: memref<8x8xf32, #tpu.memory_space<vmem>>) attributes {dimension_semantics = [#tpu.dimension_semantics<parallel>], iteration_bounds = array<i64: 2>, scalar_prefetch = 0 : i64, scratch_operands = 0 : i64, tpu.core_type = #tpu.core_type<tc>, window_params = [{transform_indices = @transform_0, window_bounds = array<i64: 8, 32>}, {transform_indices = @transform_1, window_bounds = array<i64: 8, 128>}, {pipeline_mode = #tpu.pipeline_mode<synchronous>, transform_indices = @transform_2, window_bounds = array<i64: 128, 256>}, {pipeline_mode = #tpu.pipeline_mode<synchronous>, transform_indices = @transform_3, window_bounds = array<i64: 1, 256>}, {transform_indices = @transform_4, window_bounds = array<i64: 8, 8>}]} {
    %c0 = arith.constant 0 : index
    %c0_0 = arith.constant 0 : index
    %0 = vector.load %arg2[%c0, %c0_0] : memref<8x128xf32, #tpu.memory_space<vmem>>, vector<8x128xf32>
    %c0_1 = arith.constant 0 : index
    %c0_2 = arith.constant 0 : index
    %1 = vector.load %arg3[%c0_1, %c0_2] : memref<128x256xf32, #tpu.memory_space<vmem>>, vector<128x256xf32>
    %cst = arith.constant dense<0.000000e+00> : vector<8x256xf32>
    %2 = tpu.matmul %0, %1, %cst {dimension_numbers = #tpu.dot_dimension_numbers<[1], [0], [0], [1], [0, 0, 1, 1], [], []>} : vector<8x128xf32>, vector<128x256xf32>, vector<8x256xf32> -> vector<8x256xf32>
    %c0_3 = arith.constant 0 : index
    %c0_4 = arith.constant 0 : index
    %3 = vector.load %arg4[%c0_3, %c0_4] : memref<1x256xf32, #tpu.memory_space<vmem>>, vector<1x256xf32>
    %4 = vector.broadcast %3 : vector<1x256xf32> to vector<8x256xf32>
    %5 = arith.addf %2, %4 : vector<8x256xf32>
    %6 = math.tanh %5 : vector<8x256xf32>
    %7 = vector.shape_cast %6 : vector<8x256xf32> to vector<8x8x32xf32>
    %c0_5 = arith.constant 0 : index
    %c0_6 = arith.constant 0 : index
    %8 = vector.load %arg1[%c0_5, %c0_6] : memref<8x32xf32, #tpu.memory_space<vmem>>, vector<8x32xf32>
    %9 = vector.shape_cast %8 : vector<8x32xf32> to vector<8x1x32xf32>
    %10 = vector.broadcast %9 : vector<8x1x32xf32> to vector<8x8x32xf32>
    %11 = arith.mulf %7, %10 : vector<8x8x32xf32>
    %cst_7 = arith.constant dense<0.000000e+00> : vector<8x8xf32>
    %12 = vector.multi_reduction <add>, %11, %cst_7 [2] : vector<8x8x32xf32> to vector<8x8xf32>
    %cst_8 = arith.constant dense<0xFF800000> : vector<8xf32>
    %13 = vector.multi_reduction <maximumf>, %12, %cst_8 [1] : vector<8x8xf32> to vector<8xf32>
    %14 = vector.shape_cast %13 : vector<8xf32> to vector<8x1xf32>
    %15 = vector.broadcast %14 : vector<8x1xf32> to vector<8x8xf32>
    %16 = arith.subf %12, %15 : vector<8x8xf32>
    %17 = math.exp %16 : vector<8x8xf32>
    %cst_9 = arith.constant dense<0.000000e+00> : vector<8xf32>
    %18 = vector.multi_reduction <add>, %17, %cst_9 [1] : vector<8x8xf32> to vector<8xf32>
    %19 = vector.shape_cast %18 : vector<8xf32> to vector<8x1xf32>
    %20 = math.log %19 : vector<8x1xf32>
    %21 = vector.broadcast %20 : vector<8x1xf32> to vector<8x8xf32>
    %22 = arith.subf %16, %21 : vector<8x8xf32>
    %c0_10 = arith.constant 0 : index
    %c0_11 = arith.constant 0 : index
    %23 = vector.load %arg5[%c0_10, %c0_11] : memref<8x8xf32, #tpu.memory_space<vmem>>, vector<8x8xf32>
    tpu.vector_store %arg5[%c0_10, %c0_11], %22 {strides = array<i32>} : memref<8x8xf32, #tpu.memory_space<vmem>>, vector<8x8xf32>,
    return
  }
  func.func @transform_0(%arg0: i32) -> (i32, i32) {
    %c0_i32 = arith.constant 0 : i32
    %c0_i32_0 = arith.constant 0 : i32
    return %arg0, %c0_i32 : i32, i32
  }
  func.func @transform_1(%arg0: i32) -> (i32, i32) {
    %c0_i32 = arith.constant 0 : i32
    %c0_i32_0 = arith.constant 0 : i32
    return %arg0, %c0_i32 : i32, i32
  }
  func.func @transform_2(%arg0: i32) -> (i32, i32) {
    %c0_i32 = arith.constant 0 : i32
    %c0_i32_0 = arith.constant 0 : i32
    %c0_i32_1 = arith.constant 0 : i32
    return %c0_i32, %c0_i32_0 : i32, i32
  }
  func.func @transform_3(%arg0: i32) -> (i32, i32) {
    %c0_i32 = arith.constant 0 : i32
    %c0_i32_0 = arith.constant 0 : i32
    %c0_i32_1 = arith.constant 0 : i32
    return %c0_i32, %c0_i32_0 : i32, i32
  }
  func.func @transform_4(%arg0: i32) -> (i32, i32) {
    %c0_i32 = arith.constant 0 : i32
    %c0_i32_0 = arith.constant 0 : i32
    return %arg0, %c0_i32 : i32, i32
  }
}

</mosaic_0001>

<bundles_post_ra>
// kernel: tpu_custom_call.1
= control target key start
LH: loop header
LB: loop body
LE: loop exit
PB: predicated region body
PF: predicated region fallthrough
CT: control target
= control target key end

     0   :  { %9 = vsyncpa [#allocation3], 0  ;;  %s1684_s0 = inlined_call_operand.hbm [shape: f32[16,32], index: 0, kind: input, shape index: {}]   ;;  %s1685_s1 = inlined_call_operand.hbm [shape: f32[16,128], index: 1, kind: input, shape index: {}]   ;;  %s1686_s2 = inlined_call_operand.hbm [shape: f32[128,256], index: 2, kind: input, shape index: {}]   ;;  %s1687_s3 = inlined_call_operand.vmem [shape: f32[1,256], index: 3, kind: input, shape index: {}]   ;;  %s1688_s4 = inlined_call_operand.vmem [shape: f32[16,8], index: 4, kind: output, shape index: {}]  }
   0x1   :  { %11 = vsyncpa [#allocation3 + $0x1], 0 }
   0x2   :  { %12 = vsyncpa [#allocation5], 0 }
   0x3   :  { %14 = vsyncpa [#allocation5 + $0x1], 0  ;;  %s1353_s15 = smov 0   ;;  %s1355_s16 = smov 0  }
   0x4   :  { %s1357_s17 = smov 0   ;;  %s1359_s18 = smov 0  }
   0x5 LB: > { %s1372_s19 = sadd.s32 4294967295, %s1313_s18   ;;  %p40_p0 = scmp.ne.s32.totalorder %s1305_s16, %s1301_s15  ;;  %s1313_s18 = sphi %s1359_s18, %s1703_s18   ;;  %s1309_s17 = sphi %s1357_s17, %s1702_s17   ;;  %s1305_s16 = sphi %s1355_s16, %s1701_s16   ;;  %s1301_s15 = sphi %s1353_s15, %s1700_s15  }
   0x6   : > { %p1689_p1 = scmp.eq.s32.totalorder %s1372_s19, 0  ;;  %p1085_p2 = scmp.ge.s32.totalorder %s1313_s18, 1 }
   0x7   : > { %p145_p3 = scmp.lt.s32.totalorder %s1313_s18, 3  ;;  %s1315_s22 = smov [#allocation6]  }
   0x8   : > { %p1380_p4 = por %p1689_p1, %p40_p0  ;;  %s157_s23 = sshll.u32 %s1315_s22, 4  ;;  %s158_s23 = int_to_ptr.vmem [resolvable:$true] %s157_s23 }
   0x9   : > { %p1384_p5 = pnand %p1085_p2, %p145_p3  ;;  %s1397_s25 = sadd.s32 1, %s1313_s18  }
   0xa   : > { %s1692_s20 = scalar_select %p1380_p4, 1, 0 }
   0xb   : > { %s1693_s21 = scalar_select %p1384_p5, 1, 0 }
   0xc   : > { %p1107_p6 = pneg %p1384_p5  ;;  %s27_s26 = sadd.s32 1, %s1309_s17 }
   0xd   : > { %s24_s27 = ssub.s32 %s1313_s18, %s1397_s25  ;;  %s1200_s28 = scalar_lea.vmem %s158_s23, 4096 }
   0xe   : > { %p1392_p7 = pnand %p1107_p6, %p1689_p1  ;;  %p1201_p9 = scmp.ne.s32.totalorder %s158_s23, %s1200_s28 }
   0xf   : > { %p1208_p12 = scmp.lt.s32.totalorder %s158_s23, %s158_s23  ;;  %p1209_p13 = scmp.lt.s32.totalorder %s1200_s28, %s1200_s28 }
  0x10   : > { %p1191_p8 = pneg %p1392_p7 }
  0x11   : > { %p1210_p0 = por %p1209_p13, %p1208_p12 }
  0x12   : > { %p1203_p10 = pnand %p1201_p9, %p1191_p8 }
  0x14   : > { %p1204_p11 = pneg %p1203_p10 }
  0x16   : > { %p1211_p2 = pnand %p1210_p0, %p1204_p11 }
  0x18   : > { %1214 = shalt.err (!%p1211_p2)
}
  0x19   : > { %s1316_s29 = smov 256   ;;  %s1317_s30 = smov 16  }
  0x1a   : > { %1110 = dma.hbm_to_vmem [thread:$0]  (!%p1392_p7), %s1686_s2, 4096, %s158_s23, [#allocation5], %s1316_s29, %s1316_s29, %s1317_s30  }
  0x1b   : > { %p25_p3 = scmp.eq.s32.totalorder %s24_s27, 0  ;;  %p34_p6 = scmp.ne.s32.totalorder %s1309_s17, %s1305_s16 }
  0x1c   : > { %p35_p8 = scmp.eq.s32.totalorder %s1313_s18, 0  ;;  %p1119_p9 = scmp.lt.s32.totalorder %s1313_s18, 2 }
  0x1d   : > { %s1414_s7 = scalar_select %p25_p3, %s1309_s17, %s27_s26  }
  0x1e   : > { %p36_p10 = por %p35_p8, %p34_p6  ;;  %s174_s8 = sand.u32 1, %s1309_s17  }
  0x1f   : > { %s1417_s9 = sshll.u32 %s174_s8, 3  ;;  %s1089_s10 = sshll.u32 %s1313_s18, 7 }
  0x20   : > { %s1423_s13 = scalar_lea.hbm %s1684_s0, %s1089_s10  ;;  %s178_s14 = scalar_lea.vmem [#allocation2], %s1417_s9 }
  0x21   : > { %s185_s15 = sshll.u32 %s178_s14, 4  ;;  %p1428_p7 = pnand %p1119_p9, %p36_p10  ;;  %s1426_s15 = int_to_ptr.vmem [resolvable:$true] %s185_s15 }
  0x22   : > { %s1435_s26 = scalar_lea.hbm %s1685_s1, %s1089_s10  ;;  %s192_s27 = sand.u32 1, %s1313_s18  }
  0x23   : > { %s175_s28 = scalar_lea.sflag [#allocation3], %s174_s8  ;;  %s1215_s29 = scalar_lea.hbm %s1423_s13, 128 }
  0x24   : > { %p1216_p11 = scmp.ne.s32.totalorder %s1423_s13, %s1215_s29  ;;  %p1217_p12 = pneg %p1428_p7 }
  0x25   : > { %s1220_s6 = scalar_lea.hbm %s1684_s0, 256  ;;  %p1221_p2 = scmp.lt.s32.totalorder %s1423_s13, %s1684_s0 }
  0x26   : > { %p1218_p13 = pnand %p1217_p12, %p1216_p11  ;;  %p1222_p3 = scmp.lt.s32.totalorder %s1220_s6, %s1215_s29 }
  0x28   : > { %p1219_p0 = pneg %p1218_p13  ;;  %p1223_p6 = por %p1222_p3, %p1221_p2 }
  0x2a   : > { %p1224_p8 = pnand %p1223_p6, %p1219_p0 }
  0x2c   : > { %1227 = shalt.err (!%p1224_p8)
}
  0x2d   : > { %s1228_s8 = scalar_lea.vmem %s1426_s15, 128  ;;  %s1318_s10 = smov [#allocation2]  }
  0x2e   : > { %p1229_p9 = scmp.ne.s32.totalorder %s1426_s15, %s1228_s8  ;;  %s1233_s14 = sshll.u32 %s1318_s10, 4  ;;  %s1234_s14 = int_to_ptr.vmem [resolvable:$false] %s1233_s14 }
  0x2f   : > { %s1235_s23 = scalar_lea.vmem %s1234_s14, 256  ;;  %p1236_p13 = scmp.lt.s32.totalorder %s1426_s15, %s1234_s14 }
  0x30   : > { %p1231_p10 = pnand %p1229_p9, %p1217_p12  ;;  %p1237_p1 = scmp.lt.s32.totalorder %s1235_s23, %s1228_s8 }
  0x32   : > { %p1232_p11 = pneg %p1231_p10  ;;  %p1238_p4 = por %p1237_p1, %p1236_p13 }
  0x34   : > { %p1239_p2 = pnand %p1238_p4, %p1232_p11 }
  0x36   : > { %1242 = shalt.err (!%p1239_p2)
}
  0x37   : > { %1114 = dma.hbm_to_vmem [thread:$0]  (!%p1428_p7), %s1423_s13, 128, %s1426_s15, %s175_s28  }
  0x38   : > { %s196_s24 = scalar_lea.vmem [#allocation4], %s1417_s9  ;;  %s193_s30 = scalar_lea.sflag [#allocation5], %s192_s27 }
  0x39   : > { %s203_s29 = sshll.u32 %s196_s24, 4  ;;  %s1243_s5 = scalar_lea.hbm %s1435_s26, 128  ;;  %s204_s29 = int_to_ptr.vmem [resolvable:$true] %s203_s29 }
  0x3a   : > { %p1244_p1 = scmp.ne.s32.totalorder %s1435_s26, %s1243_s5  ;;  %s1248_s12 = scalar_lea.hbm %s1685_s1, 256 }
  0x3b   : > { %p1249_p3 = scmp.lt.s32.totalorder %s1435_s26, %s1685_s1  ;;  %p1250_p6 = scmp.lt.s32.totalorder %s1248_s12, %s1243_s5 }
  0x3c   : > { %p1246_p4 = pnand %p1244_p1, %p1217_p12 }
  0x3d   : > { %p1251_p8 = por %p1250_p6, %p1249_p3 }
  0x3e   : > { %p1247_p0 = pneg %p1246_p4 }
  0x40   : > { %p1252_p9 = pnand %p1251_p8, %p1247_p0 }
  0x42   : > { %1255 = shalt.err (!%p1252_p9)
}
  0x43   : > { %s1256_s18 = scalar_lea.vmem %s204_s29, 128  ;;  %s1319_s9 = smov [#allocation4]  }
  0x44   : > { %p1257_p10 = scmp.ne.s32.totalorder %s204_s29, %s1256_s18  ;;  %s1261_s13 = sshll.u32 %s1319_s9, 4  ;;  %s1262_s13 = int_to_ptr.vmem [resolvable:$false] %s1261_s13 }
  0x45   : > { %s1263_s15 = scalar_lea.vmem %s1262_s13, 256  ;;  %p1264_p2 = scmp.lt.s32.totalorder %s204_s29, %s1262_s13 }
  0x46   : > { %p1259_p11 = pnand %p1257_p10, %p1217_p12  ;;  %p1265_p1 = scmp.lt.s32.totalorder %s1263_s15, %s1256_s18 }
  0x48   : > { %p1260_p13 = pneg %p1259_p11  ;;  %p1266_p4 = por %p1265_p1, %p1264_p2 }
  0x4a   : > { %p1267_p5 = pnand %p1266_p4, %p1260_p13 }
  0x4c   : > { %1270 = shalt.err (!%p1267_p5)
}
  0x4d   : > { %1117 = dma.hbm_to_vmem [thread:$0]  (!%p1428_p7), %s1435_s26, 128, %s204_s29, %s193_s30  }
  0x4e   : > { %p1696_p0 = scmp.ne.s32.totalorder %s1693_s21, 0 }
  0x4f   : > { %s214_s27 = sand.u32 (!%p1696_p0), 1, %s1305_s16   ;;  %p1697_p12 = scmp.ne.s32.totalorder (!%p1696_p0), %s1692_s20, 0 }
  0x50   : > { %212 = sbr.rel (%p1696_p0) target bundleno = 1253 (0x4e5), region = 36  ;;  %s1486_s28 = sshll.u32 (!%p1696_p0), %s214_s27, 3 }
  0x51   : > { %s215_s14 = scalar_lea.sflag (!%p1696_p0), [#allocation3], %s214_s27  ;;  %s218_s23 = scalar_lea.vmem (!%p1696_p0), [#allocation2], %s1486_s28 }
  0x55   : > { %1288 = dma.done.wait (%p1697_p12), %s215_s14, 128  }
  0x56   : > { %1290 = vsyncadd (%p1697_p12), %s215_s14, 4294967168  ;;  %s223_s22 = sand.u32 1, %s1372_s19   ;;  %s227_s21 = scalar_lea.vmem [#allocation4], %s1486_s28 }
  0x57   : > { %s224_s26 = scalar_lea.sflag [#allocation5], %s223_s22 }
  0x58   : > { %1292 = dma.done.wait (%p1697_p12), %s224_s26, 128  }
  0x59   : > { %1294 = vsyncadd (%p1697_p12), %s224_s26, 4294967168  ;;  %p1698_p5 = scmp.eq.s32.totalorder %s1372_s19, 0 }
  0x5b   : > { %1296 = dma.done.wait (%p1698_p5), [#allocation5], 4096   ;;  %p1699_p7 = pmov %p1698_p5 }
  0x5c   : > { %v1320_v0 = vmov 0.0   ;;  %v296_v1 = vld [vmem:[#allocation6 + $0xf8] sm:$0xff]  ;;  %v295_v2 = vld [vmem:[#allocation6 + $0xf0] sm:$0xff]  ;;  %v294_v3 = vld [vmem:[#allocation6 + $0xe8] sm:$0xff]  ;;  %v299_v34 = vlaneseq  ;;  %s1321_s29 = smov 32   ;;  %s1322_s30 = smov 96  }
  0x5d   : > { %1298 = vsyncadd (%p1699_p7), [#allocation5], 4294963200  ;;  %373 = vmatprep.mubr.f32.mxu0 %v1320_v0  ;;  %309 = vmatprep.subr.mxu0 %v296_v1  ;;  %v293_v4 = vld [vmem:[#allocation6 + $0xe0] sm:$0xff]  ;;  %v292_v5 = vld [vmem:[#allocation6 + $0xd8] sm:$0xff]  ;;  %s1323_s5 = smov 64   ;;  %vm637_vm0 = vcmask 261120  }
  0x5e   : > { %310 = vmatpush1.msra.mxu0 %v295_v2  ;;  %v291_v6 = vld [vmem:[#allocation6 + $0xd0] sm:$0xff]  ;;  %v290_v7 = vld [vmem:[#allocation6 + $0xc8] sm:$0xff]  ;;  %v289_v8 = vld [vmem:[#allocation6 + $0xc0] sm:$0xff]  ;;  %v1506_v35 = vshrl.u32 %v299_v34, 7  ;;  %v1324_v47 = vmov 1966171168  }
  0x5f   : > { %311 = vmatprep.subr.mxu0 %v294_v3  ;;  %v288_v9 = vld [vmem:[#allocation6 + $0xb8] sm:$0xff]  ;;  %v287_v10 = vld [vmem:[#allocation6 + $0xb0] sm:$0xff]  ;;  %v286_v11 = vld [vmem:[#allocation6 + $0xa8] sm:$0xff]  ;;  %v542_v48 = vunpack.c.l.s4 %v1324_v47  ;;  %v1325_v50 = vmov 1983009808   ;;  %vm704_vm1 = vcmask 1041409  }
  0x60   : > { %312 = vmatpush1.msra.mxu0 %v293_v4  ;;  %v285_v12 = vld [vmem:[#allocation6 + $0xa0] sm:$0xff]  ;;  %v284_v13 = vld [vmem:[#allocation6 + $0x98] sm:$0xff]  ;;  %v283_v14 = vld [vmem:[#allocation6 + $0x90] sm:$0xff]  ;;  %v1509_v36 = vsub.s32 0, %v1506_v35  ;;  %v1515_v38 = vsub.s32 1, %v1506_v35  ;;  %v405_v51 = vunpack.c.l.s4 %v1325_v50  ;;  %vm706_vm2 = vcmask 1042434  }
  0x61   : > { %313 = vmatprep.subr.mxu0 %v292_v5  ;;  %v282_v15 = vld [vmem:[#allocation6 + $0x88] sm:$0xff]  ;;  %v281_v16 = vld [vmem:[#allocation6 + $0x80] sm:$0xff]  ;;  %v280_v17 = vld [vmem:[#allocation6 + $0x78] sm:$0xff]  ;;  %v543_v49 = vunpack.c.0.s8 %v542_v48  ;;  %v1326_v56 = vmov 1934713408   ;;  %vm708_vm3 = vcmask 1043459  }
  0x62   : > { %314 = vmatpush1.msra.mxu0 %v291_v6  ;;  %v279_v18 = vld [vmem:[#allocation6 + $0x70] sm:$0xff]  ;;  %v278_v19 = vld [vmem:[#allocation6 + $0x68] sm:$0xff]  ;;  %v277_v20 = vld [vmem:[#allocation6 + $0x60] sm:$0xff]  ;;  %v406_v54 = vunpack.c.0.s8 %v405_v51  ;;  %v469_v57 = vunpack.c.l.s4 %v1326_v56  ;;  %vm710_vm4 = vcmask 1044484   ;;  %vm712_vm5 = vcmask 1045509   ;;  %p260_p3 = scmp.lt.s32.totalorder %s1372_s19, 1 }
  0x63   : > { %315 = vmatprep.subr.mxu0 %v290_v7  ;;  %v276_v21 = vld [vmem:[#allocation6 + $0x58] sm:$0xff]  ;;  %v275_v22 = vld [vmem:[#allocation6 + $0x50] sm:$0xff]  ;;  %v274_v23 = vld [vmem:[#allocation6 + $0x48] sm:$0xff]  ;;  %v1520_v52 = vsub.s32 %v543_v49, %v1506_v35  ;;  %vm714_vm6 = vcmask 1046534   ;;  %vm716_vm7 = vcmask 1047559   ;;  %vm719_vm8 = vcmask 64512  }
  0x64   : > { %316 = vmatpush1.msra.mxu0 %v289_v8  ;;  %v273_v24 = vld [vmem:[#allocation6 + $0x40] sm:$0xff]  ;;  %v272_v25 = vld [vmem:[#allocation6 + $0x38] sm:$0xff]  ;;  %v271_v26 = vld [vmem:[#allocation6 + $0x30] sm:$0xff]  ;;  %v409_v61 = vsub.s32 %v406_v54, %v1506_v35  ;;  %v470_v0 = vunpack.c.0.s8 %v469_v57  ;;  %s1705_s19 = smov (!%p260_p3, %s1372_s19), 1 }
  0x65   : > { %317 = vmatprep.subr.mxu0 %v288_v9  ;;  %v270_v27 = vld [vmem:[#allocation6 + $0x28] sm:$0xff]  ;;  %v269_v28 = vld [vmem:[#allocation6 + $0x20] sm:$0xff]  ;;  %v268_v29 = vld [vmem:[#allocation6 + $0x18] sm:$0xff]  ;;  %s1096_s6 = sshll.u32 %s1705_s19, 3 }
  0x66   : > { %318 = vmatpush1.msra.mxu0 %v287_v10  ;;  %v267_v30 = vld [vmem:[#allocation6 + $0x10] sm:$0xff]  ;;  %v266_v31 = vld [vmem:[#allocation6 + $0x8] sm:$0xff]  ;;  %v265_v32 = vld [vmem:[#allocation6] sm:$0xff]  ;;  %s263_s8 = scalar_lea.vmem %s1688_s4, %s1096_s6 }
  0x67   : > { %319 = vmatprep.subr.mxu0 %v286_v11  ;;  %v264_v33 = vld [vmem:[%s227_s21] sm:$0xff]  ;;  %v297_v37 = vld [vmem:[%s1687_s3] sm:$0x3]  ;;  %v473_v11 = vsub.s32 %v470_v0, %v1506_v35 }
  0x68   : > { %320 = vmatpush1.msra.mxu0 %v285_v12  ;;  %v302_v39 = vrot.slane %v297_v37, %v1509_v36  ;;  %v306_v40 = vrot.slane %v297_v37, %v1515_v38  ;;  %v538_v58 = vld [vmem:[%s218_s23] sm:$0xff] }
  0x69   : > { %321 = vmatprep.subr.mxu0 %v284_v13  ;;  %v547_v59 = vrot.slane %v538_v58, %v1520_v52  ;;  %v540_v60 = vcombine.high %v538_v58, %v538_v58 }
  0x6a   : > { %322 = vmatpush1.msra.mxu0 %v283_v14 }
  0x6b   : > { %323 = vmatprep.subr.mxu0 %v282_v15  ;;  %v555_v7 = vcombine.high %v547_v59, %v547_v59  ;;  %v554_v8 = vrot.slane %v540_v60, %v1520_v52  ;;  %v563_v14 = vrot.slane %v547_v59, %v1520_v52 }
  0x6c   : > { %324 = vmatpush1.msra.mxu0 %v281_v16 }
  0x6d   : > { %325 = vmatprep.subr.mxu0 %v280_v17  ;;  %v570_v15 = vrot.slane %v554_v8, %v1520_v52 }
  0x6e   : > { %326 = vmatpush1.msra.mxu0 %v279_v18 }
  0x6f   : > { %327 = vmatprep.subr.mxu0 %v278_v19  ;;  %v608_v48 = vrot.slane %v570_v15, %v1509_v36 }
  0x70   : > { %328 = vmatpush1.msra.mxu0 %v277_v20 }
  0x71   : > { %329 = vmatprep.subr.mxu0 %v276_v21 }
  0x72   : > { %330 = vmatpush1.msra.mxu0 %v275_v22 }
  0x73   : > { %331 = vmatprep.subr.mxu0 %v274_v23  ;;  %v577_v23 = vrot.slane %v555_v7, %v1520_v52 }
  0x74   : > { %332 = vmatpush1.msra.mxu0 %v273_v24 }
  0x75   : > { %333 = vmatprep.subr.mxu0 %v272_v25  ;;  %v587_v51 = vcombine.high %v577_v23, %v577_v23 }
  0x76   : > { %334 = vmatpush1.msra.mxu0 %v271_v26 }
  0x77   : > { %335 = vmatprep.subr.mxu0 %v270_v27  ;;  %v604_v0 = vrot.slane %v587_v51, %v1509_v36 }
  0x78   : > { %336 = vmatpush1.msra.mxu0 %v269_v28  ;;  %v596_v28 = vrot.slane %v577_v23, %v1509_v36 }
  0x79   : > { %337 = vmatprep.subr.mxu0 %v268_v29  ;;  %v585_v29 = vcombine.high %v563_v14, %v563_v14 }
  0x7a   : > { %338 = vmatpush1.msra.mxu0 %v267_v30  ;;  %v586_v30 = vcombine.high %v570_v15, %v570_v15 }
  0x7b   : > { %339 = vmatprep.subr.mxu0 %v266_v31  ;;  %v556_v31 = vcombine.high %v554_v8, %v554_v8  ;;  %v600_v49 = vrot.slane %v585_v29, %v1509_v36 }
  0x7c   : > { %340 = vmatpush1.msra.mxu0 %v265_v32 }
  0x7d   : > { %374 = vmatmul.mubr.f32.vlgmr.msra.gmra.mxu0 %v264_v33  ;;  %v584_v60 = vrot.slane %v556_v31, %v1520_v52 }
  0x7f   : > { %v588_v7 = vcombine.high %v584_v60, %v584_v60 }
 0x13d   : > { %v375_v41 = vpop.f32.mrf.mxu0 }
 0x13e   : > { %v376_v42 = vadd.f32 %v375_v41, %v302_v39 }
 0x13f   : > { %v377_v43 = vpop.f32.mrf.mxu0 }
 0x140   : > { %1167 = vtanh.f32 %v376_v42  ;;  %v378_v44 = vadd.f32 %v377_v43, %v306_v40  ;;  %v592_v42 = vrot.slane %v563_v14, %v1509_v36 }
 0x142   : > { %1169 = vtanh.f32 %v378_v44 }
 0x14d   : > { %v1168_v45 = vpop.eup %1167 }
 0x14e   : > { %389 = vrot.lane.b32.xlu1 %v1168_v45, %s1321_s29  ;;  %383 = vrot.lane.b32.xlu0 %v1168_v45, %s1322_s30 }
 0x14f   : > { %v1170_v46 = vpop.eup %1169 }
 0x152   : > { %393 = vrot.lane.b32.xlu1 %v1170_v46, %s1322_s30  ;;  %386 = vrot.lane.b32.xlu0 %v1168_v45, %s1323_s5 }
 0x156   : > { %399 = vrot.lane.b32.xlu1 %v1170_v46, %s1321_s29  ;;  %396 = vrot.lane.b32.xlu0 %v1170_v46, %s1323_s5 }
 0x1c0   : > { %v390_v53 = vpop.permute.xlu1 %389  ;;  %v384_v55 = vpop.permute.xlu0 %383 }
 0x1c1   : > { %v418_v1 = vcombine.low %v384_v55, %v390_v53  ;;  %v419_v2 = vcombine.high %v384_v55, %v390_v53 }
 0x1c3   : > { %v426_v12 = vrot.slane %v418_v1, %v409_v61  ;;  %v433_v13 = vrot.slane %v419_v2, %v409_v61 }
 0x1c4   : > { %v394_v62 = vpop.permute.xlu1 %393  ;;  %v387_v63 = vpop.permute.xlu0 %386 }
 0x1c5   : > { %v402_v3 = vcombine.low %v1168_v45, %v387_v63  ;;  %v403_v4 = vcombine.high %v1168_v45, %v387_v63 }
 0x1c7   : > { %v410_v5 = vrot.slane %v402_v3, %v409_v61  ;;  %v417_v6 = vrot.slane %v403_v4, %v409_v61 }
 0x1c8   : > { %v400_v9 = vpop.permute.xlu1 %399  ;;  %v397_v10 = vpop.permute.xlu0 %396 }
 0x1c9   : > { %v450_v16 = vcombine.low %v394_v62, %v400_v9  ;;  %v451_v17 = vcombine.high %v394_v62, %v400_v9  ;;  %v434_v18 = vcombine.low %v1170_v46, %v397_v10  ;;  %v435_v19 = vcombine.high %v1170_v46, %v397_v10 }
 0x1ca   : > { %v466_v20 = vcombine.low %v410_v5, %v426_v12  ;;  %v467_v21 = vcombine.high %v410_v5, %v426_v12  ;;  %v482_v22 = vcombine.low %v417_v6, %v433_v13  ;;  %v483_v40 = vcombine.high %v417_v6, %v433_v13 }
 0x1cb   : > { %v458_v24 = vrot.slane %v450_v16, %v409_v61  ;;  %v465_v25 = vrot.slane %v451_v17, %v409_v61  ;;  %v442_v26 = vrot.slane %v434_v18, %v409_v61  ;;  %v449_v27 = vrot.slane %v435_v19, %v409_v61 }
 0x1cc   : > { %v474_v41 = vrot.slane %v466_v20, %v473_v11  ;;  %v490_v43 = vrot.slane %v482_v22, %v473_v11  ;;  %v481_v46 = vrot.slane %v467_v21, %v473_v11  ;;  %v497_v57 = vrot.slane %v483_v40, %v473_v11 }
 0x1cd   : > { %v498_v32 = vcombine.low %v442_v26, %v458_v24  ;;  %v499_v33 = vcombine.high %v442_v26, %v458_v24  ;;  %v514_v37 = vcombine.low %v449_v27, %v465_v25  ;;  %v515_v39 = vcombine.high %v449_v27, %v465_v25 }
 0x1ce   : > { %v616_v62 = vrot.slane %v586_v30, %v1509_v36  ;;  %v612_v6 = vrot.slane %v584_v60, %v1509_v36  ;;  %v671_v19 = vand.u32 127, %v299_v34 }
 0x1cf   : > { %v506_v44 = vrot.slane %v498_v32, %v473_v11  ;;  %v522_v45 = vrot.slane %v514_v37, %v473_v11  ;;  %v513_v47 = vrot.slane %v499_v33, %v473_v11  ;;  %v529_v50 = vrot.slane %v515_v39, %v473_v11 }
 0x1d0   : > { %v620_v11 = vrot.slane %v588_v7, %v1509_v36  ;;  %v1550_v21 = vsub.s32 %v671_v19, %v1506_v35  ;;  %v754_v7 = vsub.s32 7, %v1506_v35 }
 0x1d1   : > { %v531_v53 = vcombine.high %v474_v41, %v506_v44  ;;  %v530_v54 = vcombine.low %v474_v41, %v506_v44  ;;  %v534_v55 = vcombine.low %v490_v43, %v522_v45  ;;  %v532_v56 = vcombine.low %v481_v46, %v513_v47 }
 0x1d2   : > { %v536_v61 = vcombine.low %v497_v57, %v529_v50  ;;  %v533_v63 = vcombine.high %v481_v46, %v513_v47  ;;  %v535_v5 = vcombine.high %v490_v43, %v522_v45  ;;  %v537_v15 = vcombine.high %v497_v57, %v529_v50 }
 0x1d3   : > { %v630_v58 = vmul.f32 %v596_v28, %v531_v53  ;;  %v629_v59 = vmul.f32 %v592_v42, %v530_v54  ;;  %v633_v3 = vmul.f32 %v608_v48, %v534_v55  ;;  %v631_v4 = vmul.f32 %v600_v49, %v532_v56 }
 0x1d4   : > { %v635_v9 = vmul.f32 %v616_v62, %v536_v61  ;;  %v632_v10 = vmul.f32 %v604_v0, %v533_v63  ;;  %v634_v14 = vmul.f32 %v612_v6, %v535_v5  ;;  %v636_v17 = vmul.f32 %v620_v11, %v537_v15 }
 0x1d5   : > { %v641_v1 = vsel %vm637_vm0, %v630_v58, 0.0  ;;  %v638_v2 = vsel %vm637_vm0, %v629_v59, 0.0  ;;  %v650_v52 = vsel %vm637_vm0, %v633_v3, 0.0  ;;  %v644_v8 = vsel %vm637_vm0, %v631_v4, 0.0 }
 0x1d6   : > { %642 = vadd.xlane.f32.xlu1 %v641_v1  ;;  %639 = vadd.xlane.f32.xlu0 %v638_v2  ;;  %v656_v12 = vsel %vm637_vm0, %v635_v9, 0.0  ;;  %v647_v13 = vsel %vm637_vm0, %v632_v10, 0.0  ;;  %v653_v16 = vsel %vm637_vm0, %v634_v14, 0.0  ;;  %v659_v18 = vsel %vm637_vm0, %v636_v17, 0.0 }
 0x1d7   : > { %v1327_v48 = vmov 0   ;;  %v734_v49 = vsub.s32 2, %v1506_v35  ;;  %v738_v50 = vsub.s32 3, %v1506_v35  ;;  %v742_v58 = vsub.s32 4, %v1506_v35 }
 0x1d8   : > { %1165 = vset.pattern.permute.xlu1 %v1327_v48  ;;  %1164 = vset.pattern.permute.xlu0 %v1327_v48  ;;  %v746_v63 = vsub.s32 5, %v1506_v35  ;;  %v750_v3 = vsub.s32 6, %v1506_v35 }
 0x1da   : > { %651 = vadd.xlane.f32.xlu1 %v650_v52  ;;  %645 = vadd.xlane.f32.xlu0 %v644_v8 }
 0x1de   : > { %657 = vadd.xlane.f32.xlu1 %v656_v12  ;;  %648 = vadd.xlane.f32.xlu0 %v647_v13 }
 0x1e2   : > { %654 = vadd.xlane.f32.xlu0 %v653_v16 }
 0x1e6   : > { %660 = vadd.xlane.f32.xlu0 %v659_v18 }
 0x25f   : > { %v640_v20 = vpop.xlane.xlu0 %639  ;;  %v643_v22 = vpop.xlane.xlu1 %642 }
 0x260   : > { %v679_v24 = vrot.slane %v643_v22, %v1550_v21  ;;  %v675_v25 = vrot.slane %v640_v20, %v1550_v21 }
 0x262   : > { %v705_v29 = vsel %vm704_vm1, %v679_v24, %v675_v25 }
 0x263   : > { %v646_v23 = vpop.xlane.xlu0 %645  ;;  %v652_v27 = vpop.xlane.xlu1 %651 }
 0x264   : > { %v683_v26 = vrot.slane %v646_v23, %v1550_v21  ;;  %v691_v32 = vrot.slane %v652_v27, %v1550_v21 }
 0x266   : > { %v707_v30 = vsel %vm706_vm2, %v683_v26, %v705_v29 }
 0x267   : > { %v649_v28 = vpop.xlane.xlu0 %648  ;;  %v658_v37 = vpop.xlane.xlu1 %657 }
 0x268   : > { %v687_v34 = vrot.slane %v649_v28, %v1550_v21  ;;  %v699_v42 = vrot.slane %v658_v37, %v1550_v21 }
 0x26a   : > { %v709_v31 = vsel %vm708_vm3, %v687_v34, %v707_v30 }
 0x26b   : > { %v655_v33 = vpop.xlane.xlu0 %654  ;;  %v711_v40 = vsel %vm710_vm4, %v691_v32, %v709_v31 }
 0x26c   : > { %v695_v39 = vrot.slane %v655_v33, %v1550_v21 }
 0x26e   : > { %v713_v41 = vsel %vm712_vm5, %v695_v39, %v711_v40 }
 0x26f   : > { %v661_v43 = vpop.xlane.xlu0 %660  ;;  %v715_v45 = vsel %vm714_vm6, %v699_v42, %v713_v41 }
 0x270   : > { %v703_v44 = vrot.slane %v661_v43, %v1550_v21 }
 0x272   : > { %v717_v46 = vsel %vm716_vm7, %v703_v44, %v715_v45 }
 0x273   : > { %v720_v47 = vsel %vm719_vm8, %v717_v46, -inf }
 0x274   : > { %721 = vmax.xlane.f32.xlu1 %v720_v47 }
 0x2fd   : > { %v722_v51 = vpop.xlane.xlu1 %721 }
 0x2fe   : > { %v727_v53 = vrot.slane %v722_v51, %v1509_v36  ;;  %v731_v54 = vrot.slane %v722_v51, %v1515_v38  ;;  %v735_v55 = vrot.slane %v722_v51, %v734_v49  ;;  %v739_v59 = vrot.slane %v722_v51, %v738_v50 }
 0x2ff   : > { %v743_v0 = vrot.slane %v722_v51, %v742_v58  ;;  %v747_v4 = vrot.slane %v722_v51, %v746_v63  ;;  %v751_v52 = vrot.slane %v722_v51, %v750_v3  ;;  %v755_v11 = vrot.slane %v722_v51, %v754_v7 }
 0x300   : > { %v1574_v56 = vsub.f32 %v640_v20, %v727_v53  ;;  %v1576_v57 = vsub.f32 %v643_v22, %v731_v54  ;;  %v1581_v60 = vsub.f32 %v646_v23, %v735_v55  ;;  %v1588_v1 = vsub.f32 %v649_v28, %v739_v59 }
 0x301   : > { %v1594_v5 = vsub.f32 %v652_v27, %v743_v0  ;;  %v1600_v8 = vsub.f32 %v655_v33, %v747_v4  ;;  %v1605_v12 = vsub.f32 %v658_v37, %v751_v52  ;;  %v1608_v15 = vsub.f32 %v661_v43, %v755_v11 }
 0x302   : > { %v772_v61 = vmul.f32 1.442695, %v1574_v56  ;;  %v774_v62 = vmul.f32 1.442695, %v1576_v57  ;;  %v776_v2 = vmul.f32 1.442695, %v1581_v60 }
 0x303   : > { %v778_v6 = vmul.f32 1.442695, %v1588_v1  ;;  %v780_v9 = vmul.f32 1.442695, %v1594_v5  ;;  %v782_v13 = vmul.f32 1.442695, %v1600_v8 }
 0x304   : > { %1171 = vpow2.f32 %v772_v61  ;;  %v784_v16 = vmul.f32 1.442695, %v1605_v12  ;;  %v786_v18 = vmul.f32 1.442695, %v1608_v15 }
 0x305   : > { %1173 = vpow2.f32 %v774_v62 }
 0x306   : > { %1175 = vpow2.f32 %v776_v2 }
 0x307   : > { %1177 = vpow2.f32 %v778_v6 }
 0x308   : > { %1179 = vpow2.f32 %v780_v9 }
 0x309   : > { %1181 = vpow2.f32 %v782_v13 }
 0x30a   : > { %1183 = vpow2.f32 %v784_v16 }
 0x30b   : > { %1185 = vpow2.f32 %v786_v18 }
 0x311   : > { %v1172_v10 = vpop.eup %1171 }
 0x312   : > { %v1174_v14 = vpop.eup %1173  ;;  %797 = vperm.xlu0 %1164, %v1172_v10  }
 0x313   : > { %800 = vperm.xlu1 %1165, %v1174_v14   ;;  %v1176_v17 = vpop.eup %1175 }
 0x314   : > { %v1178_v19 = vpop.eup %1177 }
 0x315   : > { %v1180_v20 = vpop.eup %1179 }
 0x316   : > { %v1182_v22 = vpop.eup %1181 }
 0x317   : > { %803 = vperm.xlu1 %1165, %v1176_v17   ;;  %v1184_v23 = vpop.eup %1183 }
 0x318   : > { %v1186_v24 = vpop.eup %1185 }
 0x31b   : > { %806 = vperm.xlu1 %1165, %v1178_v19  }
 0x31f   : > { %809 = vperm.xlu1 %1165, %v1180_v20  }
 0x323   : > { %812 = vperm.xlu1 %1165, %v1182_v22  }
 0x327   : > { %815 = vperm.xlu1 %1165, %v1184_v23  }
 0x32b   : > { %818 = vperm.xlu1 %1165, %v1186_v24  }
 0x38d   : > { %v798_v29 = vpop.permute.xlu0 %797 }
 0x38e   : > { %v801_v25 = vpop.permute.xlu1 %800  ;;  %v823_v31 = vrot.slane %v798_v29, %v1550_v21 }
 0x38f   : > { %v827_v30 = vrot.slane %v801_v25, %v1550_v21 }
 0x391   : > { %v852_v40 = vsel %vm704_vm1, %v827_v30, %v823_v31 }
 0x392   : > { %v804_v26 = vpop.permute.xlu1 %803 }
 0x393   : > { %v831_v32 = vrot.slane %v804_v26, %v1550_v21 }
 0x395   : > { %v853_v42 = vsel %vm706_vm2, %v831_v32, %v852_v40 }
 0x396   : > { %v807_v27 = vpop.permute.xlu1 %806 }
 0x397   : > { %v835_v33 = vrot.slane %v807_v27, %v1550_v21 }
 0x399   : > { %v854_v44 = vsel %vm708_vm3, %v835_v33, %v853_v42 }
 0x39a   : > { %v810_v28 = vpop.permute.xlu1 %809 }
 0x39b   : > { %v839_v37 = vrot.slane %v810_v28, %v1550_v21 }
 0x39d   : > { %v855_v45 = vsel %vm710_vm4, %v839_v37, %v854_v44 }
 0x39e   : > { %v813_v34 = vpop.permute.xlu1 %812 }
 0x39f   : > { %v843_v41 = vrot.slane %v813_v34, %v1550_v21 }
 0x3a1   : > { %v856_v47 = vsel %vm712_vm5, %v843_v41, %v855_v45 }
 0x3a2   : > { %v816_v39 = vpop.permute.xlu1 %815 }
 0x3a3   : > { %v847_v43 = vrot.slane %v816_v39, %v1550_v21 }
 0x3a5   : > { %v857_v51 = vsel %vm714_vm6, %v847_v43, %v856_v47 }
 0x3a6   : > { %v819_v46 = vpop.permute.xlu1 %818 }
 0x3a7   : > { %v851_v48 = vrot.slane %v819_v46, %v1550_v21 }
 0x3a9   : > { %v858_v53 = vsel %vm716_vm7, %v851_v48, %v857_v51 }
 0x3aa   : > { %v860_v54 = vsel %vm719_vm8, %v858_v53, 0.0 }
 0x3ab   : > { %861 = vadd.xlane.f32.xlu1 %v860_v54 }
 0x434   : > { %v862_v55 = vpop.xlane.xlu1 %861 }
 0x435   : > { %1187 = vlog2.f32 %v862_v55 }
 0x442   : > { %v1188_v59 = vpop.eup %1187 }
 0x443   : > { %v864_v61 = vmul.f32 0.6931472, %v1188_v59 }
 0x445   : > { %v869_v62 = vrot.slane %v864_v61, %v1509_v36  ;;  %v873_v2 = vrot.slane %v864_v61, %v1515_v38  ;;  %v877_v6 = vrot.slane %v864_v61, %v734_v49  ;;  %v881_v9 = vrot.slane %v864_v61, %v738_v50 }
 0x446   : > { %v885_v36 = vrot.slane %v864_v61, %v742_v58  ;;  %v897_v58 = vrot.slane %v864_v61, %v754_v7 }
 0x447   : > { %v906_v0 = vsub.f32 %v1574_v56, %v869_v62  ;;  %v907_v4 = vsub.f32 %v1576_v57, %v873_v2  ;;  %v908_v52 = vsub.f32 %v1581_v60, %v877_v6  ;;  %v909_v10 = vsub.f32 %v1588_v1, %v881_v9 }
 0x448   : > { %v910_v38 = vsub.f32 %v1594_v5, %v885_v36  ;;  %v889_v56 = vrot.slane %v864_v61, %v746_v63  ;;  %v893_v57 = vrot.slane %v864_v61, %v750_v3  ;;  %v913_v60 = vsub.f32 %v1608_v15, %v897_v58 }
 0x449   : > { %923 = vperm.xlu0 %1164, %v906_v0  }
 0x44a   : > { %v911_v49 = vsub.f32 %v1600_v8, %v889_v56  ;;  %v912_v50 = vsub.f32 %v1605_v12, %v893_v57 }
 0x44d   : > { %926 = vperm.xlu0 %1164, %v907_v4  }
 0x451   : > { %929 = vperm.xlu0 %1164, %v908_v52  }
 0x455   : > { %932 = vperm.xlu0 %1164, %v909_v10  }
 0x459   : > { %935 = vperm.xlu0 %1164, %v910_v38  }
 0x45d   : > { %938 = vperm.xlu0 %1164, %v911_v49  }
 0x461   : > { %941 = vperm.xlu0 %1164, %v912_v50  }
 0x465   : > { %944 = vperm.xlu0 %1164, %v913_v60  }
 0x4c4   : > { %v924_v1 = vpop.permute.xlu0 %923 }
 0x4c5   : > { %v949_v12 = vrot.slane %v924_v1, %v1550_v21 }
 0x4c8   : > { %v927_v5 = vpop.permute.xlu0 %926 }
 0x4c9   : > { %v953_v3 = vrot.slane %v927_v5, %v1550_v21 }
 0x4cb   : > { %v978_v16 = vsel %vm704_vm1, %v953_v3, %v949_v12 }
 0x4cc   : > { %v930_v63 = vpop.permute.xlu0 %929 }
 0x4cd   : > { %v957_v14 = vrot.slane %v930_v63, %v1550_v21 }
 0x4cf   : > { %v979_v18 = vsel %vm706_vm2, %v957_v14, %v978_v16 }
 0x4d0   : > { %v933_v11 = vpop.permute.xlu0 %932 }
 0x4d1   : > { %v961_v35 = vrot.slane %v933_v11, %v1550_v21 }
 0x4d3   : > { %v980_v20 = vsel %vm708_vm3, %v961_v35, %v979_v18 }
 0x4d4   : > { %v936_v13 = vpop.permute.xlu0 %935 }
 0x4d5   : > { %v965_v7 = vrot.slane %v936_v13, %v1550_v21 }
 0x4d7   : > { %v981_v22 = vsel %vm710_vm4, %v965_v7, %v980_v20 }
 0x4d8   : > { %v939_v8 = vpop.permute.xlu0 %938 }
 0x4d9   : > { %v969_v17 = vrot.slane %v939_v8, %v1550_v21 }
 0x4db   : > { %v982_v24 = vsel %vm712_vm5, %v969_v17, %v981_v22 }
 0x4dc   : > { %v942_v15 = vpop.permute.xlu0 %941 }
 0x4dd   : > { %v973_v19 = vrot.slane %v942_v15, %v1550_v21 }
 0x4df   : > { %v983_v26 = vsel %vm714_vm6, %v973_v19, %v982_v24 }
 0x4e0   : > { %v945_v23 = vpop.permute.xlu0 %944 }
 0x4e1   : > { %v977_v25 = vrot.slane %v945_v23, %v1550_v21 }
 0x4e3   : > { %v984_v27 = vsel %vm716_vm7, %v977_v25, %v983_v26 }
 0x4e4   : > { %986 = vst.msk [vmem:[%s263_s8] sm:$0xff] %vm719_vm8, %v984_v27 }
 0x4e5 PF: > { %p17_p6 = scmp.ge.s32.totalorder %s1397_s25, 4   ;;  %s1700_s15 = smov %s1305_s16 }
 0x4e6   : > { %s1701_s16 = smov %s1309_s17  ;;  %s1702_s17 = smov %s1414_s7 }
 0x4e7   : > { %s1703_s18 = smov %s1397_s25  ;;  %19 = sbr.rel (!%p17_p6) target bundleno = 5 (0x5), region = 93 }
 0x4ec   :  { %1006 = vsyncpa [#allocation3], 1 }
 0x4ed   :  { %1008 = vsyncpa [#allocation3 + $0x1], 1 }
 0x4ee   :  { %1009 = vsyncpa [#allocation5], 1 }
 0x4ef   :  { %1011 = vsyncpa [#allocation5 + $0x1], 1 }

</bundles_post_ra>
